<compile_context>
chip_gen: v7x
topology: tpu7x:2x2x1
jax: 0.10.0
libtpu: 0.0.40
codegen_flags: <defaults>
</compile_context>

<pallas_src>
import functools

import jax
import jax.numpy as jnp
from jax.experimental import pallas as pl
from jax.experimental.pallas import tpu as pltpu


# ------------------------------ fused kernel --------------------------------

def _fused_net_kernel(x_ref, wbb_ref, g_ref, pool_ref, bn_scale_ref,
                      bn_shift_ref, wn_ref, o_ref, *, s):
    """One grid step processes a block of Bt images, fully on-chip.

    x_ref    : (2C, Bt*HW)   bf16  channel-major pixels, rows = [face_ch ; ctx_ch]
    wbb_ref  : (2P, 2C)      bf16  block-diagonal baseline weight (both 1x1 convs)
    g_ref    : (P, 2P)       bf16  merged graph weight [ga^T | gb^T]
    pool_ref : (Bt, Bt*HW)   f32   block-diagonal ones/HW -> GAP on the MXU
    bn_*     : (1, P)        f32   folded BatchNorm1d(eval) scale / shift
    wn_ref   : (P, NCLS_PAD) f32   column-normalized classifier weight, lane-padded
    o_ref    : (Bt, NCLS_PAD)
    """
    # Baseline x2 (1x1 conv + ReLU) as ONE MXU dot; rows of fc are [f^T ; c^T].
    fc = jnp.maximum(
        jnp.dot(wbb_ref[...], x_ref[...],
                preferred_element_type=jnp.float32), 0.0)

    # Graph_Net x2 merged into ONE dot; rows of gT are already [fg ; cg]
    # (== torch.cat([f_graph_feat, c_graph_feat], dim=1) after pooling).
    gT = jnp.maximum(
        jnp.dot(g_ref[...], fc.astype(g_ref.dtype),
                preferred_element_type=jnp.float32), 0.0)

    # Global average pool per image on the MXU:
    #   feat[b, p] = sum_n pool[b, n] * gT[p, n]   (A @ B^T contraction)
    feat = jax.lax.dot_general(
        pool_ref[...], gT,
        dimension_numbers=(((1,), (1,)), ((), ())),
        preferred_element_type=jnp.float32)            # (Bt, P)

    # BatchNorm1d (eval) folded to a single scale/shift (hoisted constants).
    bn = feat * bn_scale_ref[...] + bn_shift_ref[...]

    # F.normalize(x, dim=-1) with torch's 1e-12 floor; rsqrt goes to the EUP.
    ssq = jnp.sum(bn * bn, axis=-1, keepdims=True)
    fn = bn * jax.lax.rsqrt(jnp.maximum(ssq, 1e-24))

    # Cosine classifier (weight pre-normalized & lane-padded) -> clamp -> * s.
    out = jnp.dot(fn, wn_ref[...], preferred_element_type=jnp.float32)
    o_ref[...] = jnp.clip(out, -1.0, 1.0) * s


# -------------------- constant (inference-time) preprocessing ---------------

def prepare_params(params):
    """Fold all inference-time constants ONCE (not per forward call)."""
    C, P = params["w_f_backbone"].shape
    n_classes = params["cls_w"].shape[1]
    ncls_pad = ((n_classes + 127) // 128) * 128

    # Block-diagonal baseline weight: rows [:P] = face 1x1 conv, [P:] = context.
    wbb = jnp.zeros((2 * P, 2 * C), jnp.float32)
    wbb = wbb.at[:P, :C].set(params["w_f_backbone"].T)
    wbb = wbb.at[P:, C:].set(params["w_c_backbone"].T)

    # Merge the two Graph_Net weight pairs:
    #   g[:, :P/2] = f_graph(f, c),  g[:, P/2:] = c_graph(c, f)
    ga = jnp.concatenate([params["wf_fgraph"], params["wc_cgraph"]], axis=1)  # f-side
    gb = jnp.concatenate([params["wc_fgraph"], params["wf_cgraph"]], axis=1)  # c-side
    gmat = jnp.concatenate([ga.T, gb.T], axis=1)        # (P, 2P)

    # Fold BatchNorm1d eval stats into scale/shift.
    eps = 1e-5
    gamma = params["bn_gamma"].reshape(1, P)
    beta = params["bn_beta"].reshape(1, P)
    mean = params["bn_mean"].reshape(1, P)
    var = params["bn_var"].reshape(1, P)
    bn_scale = gamma * jax.lax.rsqrt(var + eps)
    bn_shift = beta - mean * bn_scale

    # Classifier-weight column normalization (F.normalize(w, dim=0)), lane-padded.
    w = params["cls_w"]
    wn = w / jnp.maximum(jnp.sqrt(jnp.sum(w * w, axis=0, keepdims=True)), 1e-12)
    wn_pad = jnp.pad(wn, ((0, 0), (0, ncls_pad - n_classes)))

    return {
        "wbb": wbb.astype(jnp.bfloat16),       # MXU operands in bf16
        "gmat": gmat.astype(jnp.bfloat16),
        "bn_scale": bn_scale.astype(jnp.float32),
        "bn_shift": bn_shift.astype(jnp.float32),
        "wn_pad": wn_pad.astype(jnp.float32),
        "n_classes": n_classes,
        "planes": P,
    }


# ------------------------------- wrapper -------------------------------------

def net_forward(face, context, prep, *, s=20.0):
    """Full eval forward of Net (is_depression=False, no label). Jit me."""
    B, C, H, W_ = face.shape
    HW = H * W_
    P = prep["planes"]
    ncls_pad = prep["wn_pad"].shape[1]

    # Two grid steps when possible (one per v7x TensorCore); each handles
    # Bt = ceil(B/2) images so step overhead amortizes as B grows.
    num_steps = 2 if B >= 2 else 1
    bt = -(-B // num_steps)
    bpad = num_steps * bt

    # Stay channel-major: stack [face ; context] on channels, HW on the lane
    # axis.  The tiny batch<->channel permute fuses under jit.
    x = jnp.concatenate([face, context], axis=1).reshape(B, 2 * C, HW)
    if bpad != B:
        x = jnp.pad(x, ((0, bpad - B), (0, 0), (0, 0)))
    x = jnp.transpose(x, (1, 0, 2)).reshape(2 * C, bpad * HW).astype(jnp.bfloat16)

    # Block-diagonal GAP matrix (constant under jit): row b has 1/HW over the
    # HW columns belonging to image b of the block.
    pool = jnp.repeat(jnp.eye(bt, dtype=jnp.float32), HW, axis=1) / HW

    kernel = functools.partial(_fused_net_kernel, s=float(s))
    out = pl.pallas_call(
        kernel,
        out_shape=jax.ShapeDtypeStruct((num_steps, bt, ncls_pad), jnp.float32),
        grid=(num_steps,),
        in_specs=[
            pl.BlockSpec((2 * C, bt * HW), lambda i: (0, i)),    # pixels
            pl.BlockSpec((2 * P, 2 * C), lambda i: (0, 0)),      # block-diag baseline
            pl.BlockSpec((P, 2 * P), lambda i: (0, 0)),          # merged graph weight
            pl.BlockSpec((bt, bt * HW), lambda i: (0, 0)),       # GAP matrix
            pl.BlockSpec((1, P), lambda i: (0, 0)),              # bn scale
            pl.BlockSpec((1, P), lambda i: (0, 0)),              # bn shift
            pl.BlockSpec((P, ncls_pad), lambda i: (0, 0)),       # normalized cls w
        ],
        out_specs=pl.BlockSpec((None, bt, ncls_pad), lambda i: (i, 0, 0)),
        compiler_params=pltpu.CompilerParams(
            dimension_semantics=("parallel",)),
    )(x, prep["wbb"], prep["gmat"], pool, prep["bn_scale"], prep["bn_shift"],
      prep["wn_pad"])

    return out.reshape(bpad, ncls_pad)[:B, :prep["n_classes"]]


# ------------------------ pure-JAX reference (sanity) -----------------------

def net_forward_ref(face, context, params, mm_dtype=jnp.float32):
    """Mirrors the PyTorch eval path. mm_dtype casts the matmul operands only."""
    B, C, H, W_ = face.shape
    HW = H * W_
    P = params["w_f_backbone"].shape[1]
    P2 = P // 2

    def mm(a, b):
        return jnp.dot(a.astype(mm_dtype), b.astype(mm_dtype),
                       preferred_element_type=jnp.float32)

    def bb(x, w):
        xr = jnp.transpose(x, (0, 2, 3, 1)).reshape(B * HW, C)
        return jnp.maximum(mm(xr, w), 0.0)

    f = bb(face, params["w_f_backbone"])
    c = bb(context, params["w_c_backbone"])
    fg = jnp.maximum(mm(f, params["wf_fgraph"]) + mm(c, params["wc_fgraph"]), 0.0)
    cg = jnp.maximum(mm(c, params["wf_cgraph"]) + mm(f, params["wc_cgraph"]), 0.0)
    gf = fg.reshape(B, HW, P2).mean(axis=1)
    gc = cg.reshape(B, HW, P2).mean(axis=1)
    feat = jnp.concatenate([gf, gc], axis=-1)
    bn = ((feat - params["bn_mean"].reshape(1, P))
          / jnp.sqrt(params["bn_var"].reshape(1, P) + 1e-5)
          * params["bn_gamma"].reshape(1, P) + params["bn_beta"].reshape(1, P))
    fn = bn / jnp.maximum(jnp.linalg.norm(bn, axis=-1, keepdims=True), 1e-12)
    w = params["cls_w"]
    wn = w / jnp.maximum(jnp.linalg.norm(w, axis=0, keepdims=True), 1e-12)
    return jnp.clip(fn @ wn, -1.0, 1.0) * 20.0


# ----------------------------- main -----------------------------------------

if __name__ == "__main__":
    B, C_in, H, W_ = 2, 4, 16, 16       # face / context: NCHW
    P, n_classes = 32, 8                # out_planes, classes
    P2 = P // 2

    key = jax.random.PRNGKey(0)
    ks = jax.random.split(key, 9)

    def kaiming(k, shape, fan_in):
        return jax.random.normal(k, shape, jnp.float32) * jnp.sqrt(2.0 / fan_in)

    params = {
        "w_f_backbone": kaiming(ks[0], (C_in, P), C_in),
        "w_c_backbone": kaiming(ks[1], (C_in, P), C_in),
        "wf_fgraph":    kaiming(ks[2], (P, P2), P),
        "wc_fgraph":    kaiming(ks[3], (P, P2), P),
        "wf_cgraph":    kaiming(ks[4], (P, P2), P),
        "wc_cgraph":    kaiming(ks[5], (P, P2), P),
        # BatchNorm1d after weights_init_kaiming: gamma=1, beta=0; eval stats.
        "bn_gamma": jnp.ones((1, P), jnp.float32),
        "bn_beta":  jnp.zeros((1, P), jnp.float32),
        "bn_mean":  jnp.zeros((1, P), jnp.float32),
        "bn_var":   jnp.ones((1, P), jnp.float32),
        # kaiming_uniform_(mode='fan_in', nonlinearity='relu').
        "cls_w": jax.random.uniform(ks[6], (P, n_classes), jnp.float32,
                                    -jnp.sqrt(6.0 / n_classes),
                                    jnp.sqrt(6.0 / n_classes)),
    }

    face = jax.random.normal(ks[7], (B, C_in, H, W_), jnp.float32)
    context = jax.random.normal(ks[8], (B, C_in, H, W_), jnp.float32)

    # Constant preprocessing done ONCE; the per-call wrapper is jitted so the
    # remaining layout ops (concat / permute / pad) fuse with the kernel call.
    prep = prepare_params(params)
    fwd = jax.jit(lambda f, c: net_forward(f, c, prep, s=20.0))

    out = jax.block_until_ready(fwd(face, context))
    assert out.shape == (B, n_classes)

    # Exact-semantics check against a reference with matching bf16 MXU operands.
    ref_bf16 = net_forward_ref(face, context, params, mm_dtype=jnp.bfloat16)
    assert jnp.allclose(out, ref_bf16, atol=1e-2, rtol=1e-2)

    # Gross sanity against the full-f32 reference (bf16 operand rounding only).
    ref_f32 = net_forward_ref(face, context, params, mm_dtype=jnp.float32)
    assert jnp.allclose(out, ref_f32, atol=3e-1, rtol=5e-2)

    print("KERNEL_OK")
</pallas_src>

<mosaic_0001>
module attributes {stable_mosaic.version = 11 : i64} {
  func.func @_fused_net_kernel(%arg0: i32, %arg1: memref<8x256xbf16, #tpu.memory_space<vmem>>, %arg2: memref<64x8xbf16, #tpu.memory_space<vmem>>, %arg3: memref<32x64xbf16, #tpu.memory_space<vmem>>, %arg4: memref<1x256xf32, #tpu.memory_space<vmem>>, %arg5: memref<1x32xf32, #tpu.memory_space<vmem>>, %arg6: memref<1x32xf32, #tpu.memory_space<vmem>>, %arg7: memref<32x128xf32, #tpu.memory_space<vmem>>, %arg8: memref<1x1x128xf32, #tpu.memory_space<vmem>>) attributes {dimension_semantics = [#tpu.dimension_semantics<parallel>], iteration_bounds = array<i64: 2>, scalar_prefetch = 0 : i64, scratch_operands = 0 : i64, tpu.core_type = #tpu.core_type<tc>, window_params = [{transform_indices = @transform_0, window_bounds = array<i64: 8, 256>}, {pipeline_mode = #tpu.pipeline_mode<synchronous>, transform_indices = @transform_1, window_bounds = array<i64: 64, 8>}, {pipeline_mode = #tpu.pipeline_mode<synchronous>, transform_indices = @transform_2, window_bounds = array<i64: 32, 64>}, {pipeline_mode = #tpu.pipeline_mode<synchronous>, transform_indices = @transform_3, window_bounds = array<i64: 1, 256>}, {pipeline_mode = #tpu.pipeline_mode<synchronous>, transform_indices = @transform_4, window_bounds = array<i64: 1, 32>}, {pipeline_mode = #tpu.pipeline_mode<synchronous>, transform_indices = @transform_5, window_bounds = array<i64: 1, 32>}, {pipeline_mode = #tpu.pipeline_mode<synchronous>, transform_indices = @transform_6, window_bounds = array<i64: 32, 128>}, {transform_indices = @transform_7, window_bounds = array<i64: 1, 1, 128>}]} {
    %c0 = arith.constant 0 : index
    %c0_0 = arith.constant 0 : index
    %0 = vector.load %arg2[%c0, %c0_0] : memref<64x8xbf16, #tpu.memory_space<vmem>>, vector<64x8xbf16>
    %c0_1 = arith.constant 0 : index
    %c0_2 = arith.constant 0 : index
    %1 = vector.load %arg1[%c0_1, %c0_2] : memref<8x256xbf16, #tpu.memory_space<vmem>>, vector<8x256xbf16>
    %cst = arith.constant dense<0.000000e+00> : vector<64x256xf32>
    %2 = tpu.matmul %0, %1, %cst {dimension_numbers = #tpu.dot_dimension_numbers<[1], [0], [0], [1], [0, 0, 1, 1], [], []>} : vector<64x8xbf16>, vector<8x256xbf16>, vector<64x256xf32> -> vector<64x256xf32>
    %cst_3 = arith.constant 0.000000e+00 : f32
    %3 = vector.broadcast %cst_3 : f32 to vector<64x256xf32>
    %4 = arith.maximumf %2, %3 : vector<64x256xf32>
    %c0_4 = arith.constant 0 : index
    %c0_5 = arith.constant 0 : index
    %5 = vector.load %arg3[%c0_4, %c0_5] : memref<32x64xbf16, #tpu.memory_space<vmem>>, vector<32x64xbf16>
    %6 = arith.truncf %4 : vector<64x256xf32> to vector<64x256xbf16>
    %cst_6 = arith.constant dense<0.000000e+00> : vector<32x256xf32>
    %7 = tpu.matmul %5, %6, %cst_6 {dimension_numbers = #tpu.dot_dimension_numbers<[1], [0], [0], [1], [0, 0, 1, 1], [], []>} : vector<32x64xbf16>, vector<64x256xbf16>, vector<32x256xf32> -> vector<32x256xf32>
    %cst_7 = arith.constant 0.000000e+00 : f32
    %8 = vector.broadcast %cst_7 : f32 to vector<32x256xf32>
    %9 = arith.maximumf %7, %8 : vector<32x256xf32>
    %c0_8 = arith.constant 0 : index
    %c0_9 = arith.constant 0 : index
    %10 = vector.load %arg4[%c0_8, %c0_9] : memref<1x256xf32, #tpu.memory_space<vmem>>, vector<1x256xf32>
    %cst_10 = arith.constant dense<0.000000e+00> : vector<1x32xf32>
    %11 = tpu.matmul %10, %9, %cst_10 {dimension_numbers = #tpu.dot_dimension_numbers<[1], [1], [0], [0], [0, 0, 1, 0], [], []>} : vector<1x256xf32>, vector<32x256xf32>, vector<1x32xf32> -> vector<1x32xf32>
    %c0_11 = arith.constant 0 : index
    %c0_12 = arith.constant 0 : index
    %12 = vector.load %arg5[%c0_11, %c0_12] : memref<1x32xf32, #tpu.memory_space<vmem>>, vector<1x32xf32>
    %13 = arith.mulf %11, %12 : vector<1x32xf32>
    %c0_13 = arith.constant 0 : index
    %c0_14 = arith.constant 0 : index
    %14 = vector.load %arg6[%c0_13, %c0_14] : memref<1x32xf32, #tpu.memory_space<vmem>>, vector<1x32xf32>
    %15 = arith.addf %13, %14 : vector<1x32xf32>
    %16 = arith.mulf %15, %15 : vector<1x32xf32>
    %cst_15 = arith.constant dense<0.000000e+00> : vector<1xf32>
    %17 = vector.multi_reduction <add>, %16, %cst_15 [1] : vector<1x32xf32> to vector<1xf32>
    %18 = vector.shape_cast %17 : vector<1xf32> to vector<1x1xf32>
    %cst_16 = arith.constant 1.000000e-24 : f32
    %19 = vector.broadcast %cst_16 : f32 to vector<1x1xf32>
    %20 = arith.maximumf %18, %19 : vector<1x1xf32>
    %21 = math.rsqrt %20 : vector<1x1xf32>
    %22 = vector.broadcast %21 : vector<1x1xf32> to vector<1x32xf32>
    %23 = arith.mulf %15, %22 : vector<1x32xf32>
    %c0_17 = arith.constant 0 : index
    %c0_18 = arith.constant 0 : index
    %24 = vector.load %arg7[%c0_17, %c0_18] : memref<32x128xf32, #tpu.memory_space<vmem>>, vector<32x128xf32>
    %cst_19 = arith.constant dense<0.000000e+00> : vector<1x128xf32>
    %25 = tpu.matmul %23, %24, %cst_19 {dimension_numbers = #tpu.dot_dimension_numbers<[1], [0], [0], [1], [0, 0, 1, 1], [], []>} : vector<1x32xf32>, vector<32x128xf32>, vector<1x128xf32> -> vector<1x128xf32>
    %cst_20 = arith.constant -1.000000e+00 : f32
    %cst_21 = arith.constant 1.000000e+00 : f32
    %26 = vector.broadcast %cst_20 : f32 to vector<1x128xf32>
    %27 = arith.maximumf %26, %25 : vector<1x128xf32>
    %28 = vector.broadcast %cst_21 : f32 to vector<1x128xf32>
    %29 = arith.minimumf %28, %27 : vector<1x128xf32>
    %cst_22 = arith.constant 2.000000e+01 : f32
    %30 = vector.broadcast %cst_22 : f32 to vector<1x128xf32>
    %31 = arith.mulf %29, %30 : vector<1x128xf32>
    %c0_23 = arith.constant 0 : index
    %c0_24 = arith.constant 0 : index
    %c0_25 = arith.constant 0 : index
    %32 = vector.load %arg8[%c0_23, %c0_24, %c0_25] : memref<1x1x128xf32, #tpu.memory_space<vmem>>, vector<1x1x128xf32>
    %33 = vector.shape_cast %32 : vector<1x1x128xf32> to vector<1x128xf32>
    %34 = vector.shape_cast %31 : vector<1x128xf32> to vector<1x1x128xf32>
    tpu.vector_store %arg8[%c0_23, %c0_24, %c0_25], %34 {strides = array<i32>} : memref<1x1x128xf32, #tpu.memory_space<vmem>>, vector<1x1x128xf32>,
    return
  }
  func.func @transform_0(%arg0: i32) -> (i32, i32) {
    %c0_i32 = arith.constant 0 : i32
    %c0_i32_0 = arith.constant 0 : i32
    return %c0_i32, %arg0 : i32, i32
  }
  func.func @transform_1(%arg0: i32) -> (i32, i32) {
    %c0_i32 = arith.constant 0 : i32
    %c0_i32_0 = arith.constant 0 : i32
    %c0_i32_1 = arith.constant 0 : i32
    return %c0_i32, %c0_i32_0 : i32, i32
  }
  func.func @transform_2(%arg0: i32) -> (i32, i32) {
    %c0_i32 = arith.constant 0 : i32
    %c0_i32_0 = arith.constant 0 : i32
    %c0_i32_1 = arith.constant 0 : i32
    return %c0_i32, %c0_i32_0 : i32, i32
  }
  func.func @transform_3(%arg0: i32) -> (i32, i32) {
    %c0_i32 = arith.constant 0 : i32
    %c0_i32_0 = arith.constant 0 : i32
    %c0_i32_1 = arith.constant 0 : i32
    return %c0_i32, %c0_i32_0 : i32, i32
  }
  func.func @transform_4(%arg0: i32) -> (i32, i32) {
    %c0_i32 = arith.constant 0 : i32
    %c0_i32_0 = arith.constant 0 : i32
    %c0_i32_1 = arith.constant 0 : i32
    return %c0_i32, %c0_i32_0 : i32, i32
  }
  func.func @transform_5(%arg0: i32) -> (i32, i32) {
    %c0_i32 = arith.constant 0 : i32
    %c0_i32_0 = arith.constant 0 : i32
    %c0_i32_1 = arith.constant 0 : i32
    return %c0_i32, %c0_i32_0 : i32, i32
  }
  func.func @transform_6(%arg0: i32) -> (i32, i32) {
    %c0_i32 = arith.constant 0 : i32
    %c0_i32_0 = arith.constant 0 : i32
    %c0_i32_1 = arith.constant 0 : i32
    return %c0_i32, %c0_i32_0 : i32, i32
  }
  func.func @transform_7(%arg0: i32) -> (i32, i32, i32) {
    %c0_i32 = arith.constant 0 : i32
    %c0_i32_0 = arith.constant 0 : i32
    %c0_i32_1 = arith.constant 0 : i32
    return %arg0, %c0_i32, %c0_i32_0 : i32, i32, i32
  }
}

</mosaic_0001>

<bundles_post_ra>
// kernel: div.1
= control target key start
LH: loop header
LB: loop body
LE: loop exit
PB: predicated region body
PF: predicated region fallthrough
CT: control target
= control target key end

     0   :  { %s26_s0 = inlined_call_operand.<no memory space> [shape: f32[], index: 0, kind: input, shape index: {}]   ;;  %s27_s1 = inlined_call_operand.vmem [shape: f32[1,256], index: 1, kind: output, shape index: {}]  }
   0x1   :  { %v2_v0 = vstv %s26_s0 }
   0x2   :  { %3 = vst [vmem:[%s27_s1] sm:$0x1] %v2_v0  ;;  %6 = vst [vmem:[%s27_s1 + $0x1] sm:$0x1] %v2_v0 }

// kernel: _lambda_.1
= control target key start
LH: loop header
LB: loop body
LE: loop exit
PB: predicated region body
PF: predicated region fallthrough
CT: control target
= control target key end

     0   :  { %12 = vsyncpa [#allocation3], 0  ;;  %s1118_s0 = inlined_call_operand.vmem [shape: bf16[8,512], index: 0, kind: input, shape index: {}]   ;;  %s1119_s1 = inlined_call_operand.vmem [shape: bf16[64,8], index: 1, kind: input, shape index: {}]   ;;  %s1120_s2 = inlined_call_operand.vmem [shape: bf16[32,64], index: 2, kind: input, shape index: {}]   ;;  %s1121_s3 = inlined_call_operand.vmem [shape: f32[1,256], index: 3, kind: input, shape index: {}]   ;;  %s1122_s4 = inlined_call_operand.vmem [shape: f32[1,32], index: 4, kind: input, shape index: {}]   ;;  %s1123_s5 = inlined_call_operand.vmem [shape: f32[1,32], index: 5, kind: input, shape index: {}]   ;;  %s1124_s6 = inlined_call_operand.vmem [shape: f32[32,128], index: 6, kind: input, shape index: {}]   ;;  %s1125_s7 = inlined_call_operand.hbm [shape: f32[2,1,128], index: 7, kind: output, shape index: {}]  }
   0x1   :  { %14 = vsyncpa [#allocation3 + $0x1], 0  ;;  %s974_s24 = smov 0   ;;  %s976_s25 = smov 0  }
   0x2   :  { %s978_s26 = smov 0   ;;  %s980_s27 = smov 0  }
   0x3 LB: > { %s995_s28 = sadd.s32 4294967295, %s927_s27   ;;  %s756_s29 = sadd.s32 4294967294, %s927_s27   ;;  %s927_s27 = sphi %s980_s27, %s1131_s27   ;;  %s923_s26 = sphi %s978_s26, %s1130_s26   ;;  %s919_s25 = sphi %s976_s25, %s1129_s25   ;;  %s915_s24 = sphi %s974_s24, %s1128_s24  }
   0x4   : > { %s999_s30 = sadd.s32 1, %s927_s27   ;;  %s179_s8 = sadd.s32 1, %s923_s26 }
   0x5   : > { %s176_s9 = ssub.s32 %s927_s27, %s999_s30  ;;  %p189_p0 = scmp.ne.s32.totalorder %s923_s26, %s919_s25 }
   0x6   : > { %p177_p1 = scmp.eq.s32.totalorder %s176_s9, 0  ;;  %p190_p2 = scmp.eq.s32.totalorder %s995_s28, 1 }
   0x7   : > { %p195_p3 = scmp.ne.s32.totalorder %s919_s25, %s915_s24  ;;  %p196_p4 = scmp.eq.s32.totalorder %s756_s29, 1 }
   0x8   : > { %s1010_s10 = scalar_select %p177_p1, %s923_s26, %s179_s8  }
   0x9   : > { %p1012_p5 = por %p190_p2, %p189_p0  ;;  %p1016_p6 = por %p196_p4, %p195_p3 }
   0xa   : > { %p759_p7 = scmp.ge.s32.totalorder %s927_s27, 1  ;;  %p241_p8 = scmp.lt.s32.totalorder %s927_s27, 3 }
   0xc   : > { %p242_p9 = pnand %p759_p7, %p241_p8 }
   0xd   : > { %s760_s13 = sshll.u32 (!%p242_p9), %s995_s28, 1  ;;  %v929_v0 = vmov (!%p242_p9), 0   ;;  %vm326_vm0 = vcmask (!%p242_p9), 1043456   ;;  %v857_v5 = vld [vmem:[%s1119_s1] sm:$0xff] (!%p242_p9)   ;;  %vm313_vm1 = vcmask (!%p242_p9), 64512   ;;  %v858_v6 = vld [vmem:[%s1119_s1 + $0x8] sm:$0xff] (!%p242_p9)   ;;  %v514_v51 = vlaneseq (!%p242_p9) }
   0xe   : > { %245 = sbr.rel (%p242_p9) target bundleno = 1119 (0x45f), region = 48  ;;  %p273_p10 = scmp.lt.s32.totalorder (!%p242_p9), %s760_s13, 3  ;;  %365 = vmatprep.mubr.bf16.mxu0 (!%p242_p9), %v929_v0  ;;  %483 = vmatprep.mubr.bf16.mxu1 (!%p242_p9), %v929_v0  ;;  %v859_v7 = vld [vmem:[%s1119_s1 + $0x10] sm:$0xff] (!%p242_p9)   ;;  %v860_v8 = vld [vmem:[%s1119_s1 + $0x18] sm:$0xff] (!%p242_p9)   ;;  %v861_v49 = vld [vmem:[%s1120_s2] sm:$0xff] (!%p242_p9)   ;;  %vm444_vm2 = vcmask (!%p242_p9), 523264  }
   0xf   : > { %v862_v50 = vld [vmem:[%s1120_s2 + $0x8] sm:$0xff] (!%p242_p9)   ;;  %v515_v52 = vshrl.u32 (!%p242_p9), %v514_v51, 7  ;;  %v512_v53 = vld [vmem:[%s1121_s3] sm:$0x3] (!%p242_p9)  ;;  %vm599_vm3 = vcmask (!%p242_p9), 253952   ;;  %vm931_vm4 = vmmov (!%p242_p9), 0  }
  0x10   : > { %vm610_vm5 = vcmask (!%p242_p9), 261120   ;;  %s270_s16 = sand.u32 (!%p242_p9), 1, %s919_s25  }
  0x11   : > { %v516_v54 = vsub.s32 (!%p242_p9), 0, %v515_v52  ;;  %v520_v55 = vsub.s32 (!%p242_p9), 1, %v515_v52  ;;  %s271_s18 = scalar_lea.vmem (!%p242_p9), [#allocation2], %s270_s16  ;;  %s689_s23 = scalar_lea.sflag (!%p242_p9), [#allocation3], %s270_s16 }
  0x12   : > { %s701_s19 = sshll.u32 (!%p242_p9), %s271_s18, 4  ;;  %s1078_s19 = int_to_ptr.vmem [resolvable:$true] %s701_s19 }
  0x13   : > { %v517_v56 = vrot.slane (!%p242_p9), %v512_v53, %v516_v54  ;;  %v521_v57 = vrot.slane (!%p242_p9), %v512_v53, %v520_v55  ;;  %s865_s29 = scalar_lea.vmem (!%p242_p9), %s1078_s19, 16 }
  0x14   : > { %p866_p11 = scmp.ne.s32.totalorder (!%p242_p9), %s1078_s19, %s865_s29 }
  0x15   : > { %s1133_s13 = smov (!%p273_p10, %s760_s13), 3 }
  0x16   : > { %s761_s14 = sshll.u32 %s1133_s13, 2  ;;  %p867_p12 = pnand %p866_p11, %p1012_p5 }
  0x17   : > { %s276_s17 = scalar_lea.vmem %s1118_s0, %s761_s14 }
  0x18   : > { %v287_v1 = vld [vmem:[%s276_s17] sm:$0xff]  ;;  %s779_s17 = sshll.u32 %s995_s28, 4  ;;  %p868_p13 = pneg %p867_p12 }
  0x19   : > { %v767_v2 = vcombine.high %v287_v1, %v287_v1  ;;  %v766_v3 = vcombine.low %v287_v1, %v287_v1  ;;  %s1076_s22 = scalar_lea.hbm %s1125_s7, %s779_s17  ;;  %s933_s28 = smov [#allocation2]  }
  0x1a   : > { %s869_s8 = sshll.u32 %s933_s28, 4  ;;  %s870_s8 = int_to_ptr.vmem [resolvable:$false] %s869_s8 }
  0x1b   : > { %768 = vmatprep.subr.msk.bf16.mxu0 %vm326_vm0, %v767_v2  ;;  %v328_v4 = vsel %vm326_vm0, %v766_v3, 0  ;;  %s871_s9 = scalar_lea.vmem %s870_s8, 32  ;;  %p872_p0 = scmp.lt.s32.totalorder %s1078_s19, %s870_s8 }
  0x1c   : > { %334 = vmatpush1.bf16.msra.mxu0 %v328_v4  ;;  %p873_p1 = scmp.lt.s32.totalorder %s871_s9, %s865_s29 }
  0x1e   : > { %p874_p2 = por %p873_p1, %p872_p0 }
  0x1f   : > { %769 = vmatmul.mubr.msk.bf16.vlgmr.msra.gmra.mrb[0].mxu0 %vm313_vm1, %v857_v5 }
  0x20   : > { %375 = vmatprep.mubr.bf16.mxu0 %v929_v0  ;;  %p875_p3 = pnand %p874_p2, %p868_p13 }
  0x27   : > { %770 = vmatmul.mubr.msk.bf16.gmra.mrb[4].mxu0 %vm313_vm1, %v858_v6 }
  0x28   : > { %385 = vmatprep.mubr.bf16.mxu0 %v929_v0 }
  0x2f   : > { %771 = vmatmul.mubr.msk.bf16.gmra.mrb[8].mxu0 %vm313_vm1, %v859_v7 }
  0x30   : > { %395 = vmatprep.mubr.bf16.mxu0 %v929_v0 }
  0x37   : > { %772 = vmatmul.mubr.msk.bf16.gmra.mrb[12].mxu0 %vm313_vm1, %v860_v8 }
  0xf2   : > { %v367_v9 = vpop.f32.mrb[0].mxu0 }
  0xf3   : > { %v369_v10 = vpop.f32.mrb[1].mxu0  ;;  %v406_v12 = vmax.f32 %v367_v9, 0.0 }
  0xf4   : > { %v371_v11 = vpop.f32.mrb[2].mxu0  ;;  %v407_v15 = vmax.f32 %v369_v10, 0.0 }
  0xf5   : > { %v408_v13 = vmax.f32 %v371_v11, 0.0  ;;  %v373_v14 = vpop.f32.mrb[3].mxu0 }
  0xf6   : > { %v409_v16 = vmax.f32 %v373_v14, 0.0  ;;  %v606_v14 = vld [vmem:[%s1124_s6] sm:$0xff] }
  0xf7   : > { %v426_v17 = vpack.c.bf16 %v408_v13, %v406_v12 }
  0xf8   : > { %v427_v18 = vpack.c.bf16 %v409_v16, %v407_v15  ;;  %v607_v15 = vld [vmem:[%s1124_s6 + $0x8] sm:$0xff]  ;;  %v930_v16 = vmov 0.0|0.0  }
  0xf9   : > { %806 = vmatprep.subr.bf16.mxu0 %v930_v16 }
  0xfa   : > { %v377_v19 = vpop.f32.mrb[4].mxu0  ;;  %451 = vmatprep.subr.bf16.mxu1 %v427_v18  ;;  %v594_v18 = vld [vmem:[%s1122_s4] sm:$0x1] }
  0xfb   : > { %v379_v20 = vpop.f32.mrb[5].mxu0  ;;  %452 = vmatpush1.bf16.msra.mxu1 %v426_v17  ;;  %v410_v22 = vmax.f32 %v377_v19, 0.0  ;;  %v807_v17 = vpack.c.bf16 %v607_v15, %v606_v14 }
  0xfc   : > { %v381_v21 = vpop.f32.mrb[6].mxu0  ;;  %v411_v25 = vmax.f32 %v379_v20, 0.0  ;;  %v596_v20 = vld [vmem:[%s1123_s5] sm:$0x1] }
  0xfd   : > { %v412_v23 = vmax.f32 %v381_v21, 0.0  ;;  %v383_v24 = vpop.f32.mrb[7].mxu0  ;;  %808 = vmatpush3.bf16.msra.mxu0 %v807_v17 }
  0xfe   : > { %v413_v26 = vmax.f32 %v383_v24, 0.0  ;;  %809 = vmatprep.subr.bf16.mxu0 %v930_v16 }
  0xff   : > { %v428_v27 = vpack.c.bf16 %v412_v23, %v410_v22 }
 0x100   : > { %v429_v28 = vpack.c.bf16 %v413_v26, %v411_v25  ;;  %v608_v26 = vld [vmem:[%s1124_s6 + $0x10] sm:$0xff] }
 0x102   : > { %v387_v29 = vpop.f32.mrb[8].mxu0  ;;  %453 = vmatprep.subr.bf16.mxu1 %v429_v28 }
 0x103   : > { %v389_v30 = vpop.f32.mrb[9].mxu0  ;;  %454 = vmatpush1.bf16.msra.mxu1 %v428_v27  ;;  %v414_v32 = vmax.f32 %v387_v29, 0.0  ;;  %v609_v27 = vld [vmem:[%s1124_s6 + $0x18] sm:$0xff]  ;;  %v932_v29 = vmov 0.0  }
 0x104   : > { %v391_v31 = vpop.f32.mrb[10].mxu0  ;;  %v415_v35 = vmax.f32 %v389_v30, 0.0  ;;  %v810_v28 = vpack.c.bf16 %v609_v27, %v608_v26  ;;  %795 = vmatprep.mubr.msk.f32.mxu0 %vm931_vm4, %v932_v29 }
 0x105   : > { %v416_v33 = vmax.f32 %v391_v31, 0.0  ;;  %v393_v34 = vpop.f32.mrb[11].mxu0 }
 0x106   : > { %v417_v36 = vmax.f32 %v393_v34, 0.0  ;;  %811 = vmatpush3.bf16.msra.mxu0 %v810_v28 }
 0x107   : > { %v430_v37 = vpack.c.bf16 %v416_v33, %v414_v32 }
 0x108   : > { %v431_v38 = vpack.c.bf16 %v417_v36, %v415_v35 }
 0x10a   : > { %v397_v39 = vpop.f32.mrb[12].mxu0  ;;  %455 = vmatprep.subr.bf16.mxu1 %v431_v38 }
 0x10b   : > { %v399_v40 = vpop.f32.mrb[13].mxu0  ;;  %456 = vmatpush1.bf16.msra.mxu1 %v430_v37  ;;  %v418_v42 = vmax.f32 %v397_v39, 0.0 }
 0x10c   : > { %v401_v41 = vpop.f32.mrb[14].mxu0  ;;  %v419_v45 = vmax.f32 %v399_v40, 0.0 }
 0x10d   : > { %v420_v43 = vmax.f32 %v401_v41, 0.0  ;;  %v403_v44 = vpop.f32.mrb[15].mxu0 }
 0x10e   : > { %v421_v46 = vmax.f32 %v403_v44, 0.0 }
 0x10f   : > { %v432_v47 = vpack.c.bf16 %v420_v43, %v418_v42 }
 0x110   : > { %v433_v48 = vpack.c.bf16 %v421_v46, %v419_v45 }
 0x112   : > { %457 = vmatprep.subr.bf16.mxu1 %v433_v48 }
 0x113   : > { %458 = vmatpush1.bf16.msra.mxu1 %v432_v47 }
 0x116   : > { %775 = vmatmul.mubr.msk.bf16.vlgmr.msra.gmra.mrb[0].mxu1 %vm444_vm2, %v861_v49 }
 0x117   : > { %493 = vmatprep.mubr.bf16.mxu1 %v929_v0 }
 0x11e   : > { %776 = vmatmul.mubr.msk.bf16.gmra.mrb[4].mxu1 %vm444_vm2, %v862_v50 }
 0x11f   : > { %588 = vmatprep.mubr.f32.mxu1 %v521_v57 }
 0x1e9   : > { %v485_v58 = vpop.f32.mrb[0].mxu1 }
 0x1ea   : > { %v487_v59 = vpop.f32.mrb[1].mxu1  ;;  %v504_v61 = vmax.f32 %v485_v58, 0.0 }
 0x1eb   : > { %v489_v60 = vpop.f32.mrb[2].mxu1  ;;  %v505_v0 = vmax.f32 %v487_v59, 0.0 }
 0x1ec   : > { %v506_v62 = vmax.f32 %v489_v60, 0.0  ;;  %v491_v63 = vpop.f32.mrb[3].mxu1 }
 0x1ed   : > { %v507_v1 = vmax.f32 %v491_v63, 0.0 }
 0x1ee   : > { %v800_v2 = vpack.c.bf16 %v506_v62, %v504_v61 }
 0x1ef   : > { %v798_v3 = vpack.c.bf16 %v507_v1, %v505_v0 }
 0x1f1   : > { %v495_v4 = vpop.f32.mrb[4].mxu1  ;;  %799 = vmatprep.subr.bf16.mxu1 %v798_v3 }
 0x1f2   : > { %v497_v5 = vpop.f32.mrb[5].mxu1  ;;  %801 = vmatpush1.bf16.xpose.msra.mxu1 %v800_v2  ;;  %v508_v7 = vmax.f32 %v495_v4, 0.0 }
 0x1f3   : > { %v499_v6 = vpop.f32.mrb[6].mxu1  ;;  %v509_v10 = vmax.f32 %v497_v5, 0.0 }
 0x1f4   : > { %v510_v8 = vmax.f32 %v499_v6, 0.0  ;;  %v501_v9 = vpop.f32.mrb[7].mxu1 }
 0x1f5   : > { %v511_v11 = vmax.f32 %v501_v9, 0.0 }
 0x1f6   : > { %v804_v12 = vpack.c.bf16 %v510_v8, %v508_v7 }
 0x1f7   : > { %v802_v13 = vpack.c.bf16 %v511_v11, %v509_v10 }
 0x1f9   : > { %803 = vmatprep.subr.bf16.mxu1 %v802_v13 }
 0x1fa   : > { %805 = vmatpush1.bf16.xpose.msra.mxu1 %v804_v12 }
 0x201   : > { %589 = vmatmul.mubr.f32.vlgmr.msra.gmra.mrb[8].mxu1 %v517_v56 }
 0x2d4   : > { %v590_v19 = vpop.f32.mrb[8].mxu1 }
 0x2d5   : > { %v595_v21 = vmul.f32 %v594_v18, %v590_v19  ;;  %v592_v22 = vpop.f32.mrb[9].mxu1 }
 0x2d7   : > { %v597_v23 = vadd.f32 %v596_v20, %v595_v21 }
 0x2d9   : > { %v598_v24 = vmul.f32 %v597_v23, %v597_v23 }
 0x2db   : > { %v600_v25 = vsel %vm599_vm3, %v598_v24, 0.0 }
 0x2dc   : > { %601 = vadd.xlane.f32.xlu0 %v600_v25 }
 0x369   : > { %v602_v30 = vpop.xlane.xlu0 %601 }
 0x36a   : > { %v603_v31 = vmax.f32 %v602_v30, 1e-24 }
 0x36c   : > { %863 = vrsqrt.f32 %v603_v31 }
 0x376   : > { %v864_v32 = vpop.eup %863 }
 0x377   : > { %v605_v33 = vmul.f32 %v864_v32, %v597_v23 }
 0x379   : > { %796 = vmatmul.mubr.msk.f32.vlgmr.msra.gmra.mrb[16].mxu0 %vm610_vm5, %v605_v33 }
 0x44c   : > { %v680_v34 = vpop.f32.mrb[16].mxu0 }
 0x44d   : > { %v778_v35 = vclamps-f32 %v680_v34, 1.0  ;;  %v797_v36 = vpop.f32.mrb[17].mxu0 }
 0x44f   : > { %v686_v37 = vmul.f32 20.0, %v778_v35 }
 0x451   : > { %687 = vst [vmem:[%s271_s18] sm:$0x1] %v686_v37 }
 0x452   : > { %878 = shalt.err (!%p875_p3)
}
 0x453   : > { %s879_s13 = scalar_lea.hbm %s1076_s22, 16  ;;  %s883_s16 = scalar_lea.hbm %s1125_s7, 32 }
 0x454   : > { %p880_p4 = scmp.ne.s32.totalorder %s1076_s22, %s879_s13  ;;  %p884_p9 = scmp.lt.u32.totalorder %s1076_s22, %s1125_s7 }
 0x455   : > { %p885_p10 = scmp.lt.u32.totalorder %s883_s16, %s879_s13  ;;  %p887_p12 = scmp.lt.u32.totalorder %s879_s13, %s1076_s22 }
 0x456   : > { %p881_p7 = pnand %p880_p4, %p1012_p5 }
 0x457   : > { %p886_p11 = por %p885_p10, %p884_p9 }
 0x458   : > { %p882_p8 = pneg %p881_p7 }
 0x459   : > { %p888_p13 = por %p887_p12, %p886_p11 }
 0x45b   : > { %p889_p0 = pnand %p888_p13, %p882_p8 }
 0x45d   : > { %892 = shalt.err (!%p889_p0)
}
 0x45e   : > { %812 = dma.vmem_to_hbm [thread:$0]  (%p1012_p5), %s1078_s19, 16, %s1076_s22, %s689_s23  }
 0x45f PF: > { %p818_p1 = scmp.ge.s32.totalorder %s927_s27, 2  ;;  %s713_s20 = sand.u32 1, %s915_s24  }
 0x460   : > { %s714_s21 = scalar_lea.sflag [#allocation3], %s713_s20 }
 0x461   : > { %p815_p2 = pnand %p818_p1, %p1016_p6 }
 0x463   : > { %910 = dma.done.wait (!%p815_p2), %s714_s21, 16  }
 0x464   : > { %912 = vsyncadd (!%p815_p2), %s714_s21, 4294967280  ;;  %p17_p3 = scmp.ge.s32.totalorder %s999_s30, 4   ;;  %s1128_s24 = smov %s919_s25 }
 0x465   : > { %s1129_s25 = smov %s923_s26  ;;  %s1130_s26 = smov %s1010_s10 }
 0x466   : > { %s1131_s27 = smov %s999_s30  ;;  %19 = sbr.rel (!%p17_p3) target bundleno = 3 (0x3), region = 83 }
 0x46d   :  { %718 = vsyncpa [#allocation3], 1 }
 0x46e   :  { %720 = vsyncpa [#allocation3 + $0x1], 1 }

</bundles_post_ra>
